<compile_context>
chip_gen: v7x
topology: tpu7x:2x2x1
jax: 0.10.0
libtpu: 0.0.40
codegen_flags: <defaults>
</compile_context>

<pallas_src>
import functools

import jax
import jax.numpy as jnp
from jax.experimental import pallas as pl
from jax.experimental.pallas import tpu as pltpu

EPS = 1e-6        # GeM eps
LANES = 128
SUBLANES = 8


def _round_up(x, m):
    return (x + m - 1) // m * m


# ----------------------------------------------------------------------------
# Fused kernel: stem (1x1 conv + ReLU) -> GeM pooling -> linear head
# ----------------------------------------------------------------------------
def fused_kernel(p_ref, x_ref, wt_ref, b_ref, hwt_ref, hb_ref,
                 logits_ref, emb_ref, acc_ref, *, cin, inv_hw, p_int):
    s = pl.program_id(1)
    n_s = pl.num_programs(1)

    @pl.when(s == 0)
    def _():
        acc_ref[...] = jnp.zeros_like(acc_ref)

    # --- stem: pointwise conv as `cin` outer-product FMAs on the VPU ---------
    # x: (cin, tile_hw)  spatial on lanes;  wt: (cout, cin) channels on sublanes
    x = x_ref[...]
    wt = wt_ref[...]
    y = wt[:, 0:1] * x[0:1, :]                     # (cout, 1) * (1, tile_hw)
    for ci in range(1, cin):                       # cin tiny & static -> unrolled
        y = y + wt[:, ci:ci + 1] * x[ci:ci + 1, :]
    y = jnp.maximum(y + b_ref[...], 0.0)           # + bias, ReLU -> (cout, tile_hw)

    # --- GeM: clamp -> pow(p); partial sum over this spatial tile ------------
    xc = jnp.maximum(y, EPS)                       # x.clamp(min=eps)
    if p_int is None:                              # fractional p: EUP exp/log
        p = p_ref[0]
        xp = jnp.exp(p * jnp.log(xc))
    else:                                          # integer p (default 3): VPU only
        xp = xc
        for _ in range(p_int - 1):
            xp = xp * xc
    # cross-lane reduce (XLU) into the tiny per-image accumulator
    acc_ref[...] += jnp.sum(xp, axis=-1, keepdims=True)      # (cout, 1)

    # --- finalize on last spatial tile: mean, pow(1/p), head ------------------
    @pl.when(s == n_s - 1)
    def _():
        pooled = acc_ref[...] * inv_hw                        # avg over full (H, W)
        if p_int is None:
            emb = jnp.exp(jnp.log(pooled) / p_ref[0])         # .pow(1/p)
        else:
            emb = jnp.exp(jnp.log(pooled) * (1.0 / p_int))
        emb_ref[...] = emb                                     # (cout, 1)
        # head: (cout, ncls_pad) * (cout, 1) -> sublane reduce -> lane-dense row
        logits_ref[...] = (
            jnp.sum(hwt_ref[...] * emb, axis=0, keepdims=True) + hb_ref[...]
        )


# ----------------------------------------------------------------------------
# One-time parameter packing (channels on sublanes, classes padded to lanes)
# ----------------------------------------------------------------------------
def prepare_params(params):
    stem_w = params["stem_w"].astype(jnp.float32)          # (Cin, Cout)
    stem_b = params["stem_b"].astype(jnp.float32)          # (Cout,)
    head_w = params["head_w"].astype(jnp.float32)          # (n_classes, Cout)
    head_b = params["head_b"].astype(jnp.float32)          # (n_classes,)
    gem_p = params["gem_p"].astype(jnp.float32)            # (1,) trainable exponent
    cin, cout = stem_w.shape
    n_classes = head_w.shape[0]
    cout_p8 = _round_up(cout, SUBLANES)
    ncls_pad = _round_up(n_classes, LANES)

    # static integer-p specialization (default GeM p = 3)
    p_val = float(gem_p[0])
    p_int = int(round(p_val)) if (abs(p_val - round(p_val)) < 1e-12
                                  and 1 <= round(p_val) <= 4) else None
    return {
        "p": gem_p,
        "p_int": p_int,
        "stem_wt_pad": jnp.zeros((cout_p8, cin), jnp.float32).at[:cout, :].set(stem_w.T),
        "stem_b_pad": jnp.zeros((cout_p8, 1), jnp.float32).at[:cout, 0].set(stem_b),
        "head_wt_pad": jnp.zeros((cout_p8, ncls_pad), jnp.float32)
                          .at[:cout, :n_classes].set(head_w.T),
        "head_b_pad": jnp.zeros((1, ncls_pad), jnp.float32).at[0, :n_classes].set(head_b),
        "cout": cout,
        "n_classes": n_classes,
    }


# ----------------------------------------------------------------------------
# Full model forward (matches Model.forward: backbone -> GeM -> [:, :, 0, 0] -> head)
# ----------------------------------------------------------------------------
def model_forward(image, prep, max_tile_hw=8192):
    N, Cin, H, W = image.shape
    HW = H * W
    cout_p8 = prep["stem_wt_pad"].shape[0]
    ncls_pad = prep["head_wt_pad"].shape[1]

    # NCHW -> (N, Cin, H*W): metadata-only reshape (no transpose), spatial on lanes.
    x3d = image.reshape(N, Cin, HW).astype(jnp.float32)

    # spatial tile on the lane axis: largest multiple of 128 dividing H*W,
    # capped at max_tile_hw (a (8 x 8192) f32 input tile is only 256 KiB, and
    # the (Cout x 8192) temporaries a few MiB -> fits v7x's 32 MiB scoped VMEM).
    if HW <= max_tile_hw:
        tile_hw = HW
    else:
        tile_hw = None
        for cand in range(max_tile_hw - max_tile_hw % LANES, 0, -LANES):
            if HW % cand == 0:
                tile_hw = cand
                break
        if tile_hw is None:
            tile_hw = HW   # TODO(synk): masked remainder tiles for awkward H*W
    s_tiles = HW // tile_hw

    kernel = functools.partial(fused_kernel, cin=Cin, inv_hw=1.0 / float(HW),
                               p_int=prep["p_int"])

    logits_pad, emb_pad = pl.pallas_call(
        kernel,
        out_shape=(
            jax.ShapeDtypeStruct((N, 1, ncls_pad), jnp.float32),     # lane-dense logits row
            jax.ShapeDtypeStruct((N, cout_p8, 1), jnp.float32),      # embedding column
        ),
        grid=(N, s_tiles),   # s (reduction) MUST stay the innermost axis
        in_specs=[
            pl.BlockSpec(memory_space=pltpu.MemorySpace.SMEM),           # GeM p (scalar)
            pl.BlockSpec((None, Cin, tile_hw), lambda n, s: (n, 0, s)),  # image rows (lane-dense DMA)
            pl.BlockSpec((cout_p8, Cin), lambda n, s: (0, 0)),           # stem W^T (resident)
            pl.BlockSpec((cout_p8, 1), lambda n, s: (0, 0)),             # stem bias
            pl.BlockSpec((cout_p8, ncls_pad), lambda n, s: (0, 0)),      # head W^T (resident)
            pl.BlockSpec((1, ncls_pad), lambda n, s: (0, 0)),            # head bias
        ],
        out_specs=(
            pl.BlockSpec((None, 1, ncls_pad), lambda n, s: (n, 0, 0)),
            pl.BlockSpec((None, cout_p8, 1), lambda n, s: (n, 0, 0)),
        ),
        scratch_shapes=[pltpu.VMEM((cout_p8, 1), jnp.float32)],          # GeM sum acc
        compiler_params=pltpu.CompilerParams(
            dimension_semantics=("parallel", "arbitrary"),
            vmem_limit_bytes=32 * 1024 * 1024,
        ),
    )(prep["p"], x3d, prep["stem_wt_pad"], prep["stem_b_pad"],
      prep["head_wt_pad"], prep["head_b_pad"])

    logits = logits_pad[:, 0, :prep["n_classes"]]
    emb = emb_pad[:, :prep["cout"], 0]
    return {"logits": logits, "embeddings": emb}


# ----------------------------------------------------------------------------
# Pure-JAX reference for correctness check
# ----------------------------------------------------------------------------
def reference_forward(image, params):
    N, Cin, H, W = image.shape
    x = jnp.transpose(image, (0, 2, 3, 1)).reshape(N, H * W, Cin)
    feat = jnp.maximum(x @ params["stem_w"] + params["stem_b"], 0.0)      # (N, HW, Cout)
    p = params["gem_p"][0]
    pooled = jnp.mean(jnp.maximum(feat, EPS) ** p, axis=1) ** (1.0 / p)   # (N, Cout)
    logits = pooled @ params["head_w"].T + params["head_b"]
    return {"logits": logits, "embeddings": pooled}


if __name__ == "__main__":
    key = jax.random.PRNGKey(0)
    k_img, k_sw, k_hw, k_hb = jax.random.split(key, 4)

    # small shapes: batch=2, 3-channel 16x16 image, 32 backbone features, 11 classes
    N, Cin, H, W = 2, 3, 16, 16
    Cout, n_classes = 32, 11

    image = jax.random.normal(k_img, (N, Cin, H, W), dtype=jnp.float32) + 1.0

    params = {
        "stem_w": jax.random.normal(k_sw, (Cin, Cout), dtype=jnp.float32) * 0.1,
        "stem_b": jnp.zeros((Cout,), dtype=jnp.float32),
        "gem_p": jnp.ones((1,), dtype=jnp.float32) * 3.0,   # trainable GeM p (default 3)
        "head_w": jax.random.normal(k_hw, (n_classes, Cout), dtype=jnp.float32) * 0.1,
        "head_b": jax.random.normal(k_hb, (n_classes,), dtype=jnp.float32) * 0.01,
    }

    # 1) default integer-p fast path; force 2 spatial tiles to exercise the
    #    cross-tile accumulation / finalize logic.
    prep = prepare_params(params)
    out = model_forward(image, prep, max_tile_hw=128)
    jax.block_until_ready(out)
    assert out["logits"].shape == (N, n_classes)
    assert out["embeddings"].shape == (N, Cout)
    ref = reference_forward(image, params)
    assert jnp.allclose(out["logits"], ref["logits"], rtol=5e-3, atol=5e-3)
    assert jnp.allclose(out["embeddings"], ref["embeddings"], rtol=5e-3, atol=5e-3)

    # 2) fractional-p general path (exp/log), single spatial tile.
    params_frac = dict(params, gem_p=jnp.ones((1,), dtype=jnp.float32) * 2.5)
    prep_frac = prepare_params(params_frac)
    out_frac = model_forward(image, prep_frac)
    jax.block_until_ready(out_frac)
    ref_frac = reference_forward(image, params_frac)
    assert jnp.allclose(out_frac["logits"], ref_frac["logits"], rtol=5e-3, atol=5e-3)
    assert jnp.allclose(out_frac["embeddings"], ref_frac["embeddings"], rtol=5e-3, atol=5e-3)

    print("KERNEL_OK")
</pallas_src>

<mosaic_0001>
module attributes {stable_mosaic.version = 11 : i64} {
  func.func @fused_kernel(%arg0: i32, %arg1: i32, %arg2: memref<1xf32, #tpu.memory_space<smem>>, %arg3: memref<1x3x128xf32, #tpu.memory_space<vmem>>, %arg4: memref<32x3xf32, #tpu.memory_space<vmem>>, %arg5: memref<32x1xf32, #tpu.memory_space<vmem>>, %arg6: memref<32x128xf32, #tpu.memory_space<vmem>>, %arg7: memref<1x128xf32, #tpu.memory_space<vmem>>, %arg8: memref<1x1x128xf32, #tpu.memory_space<vmem>>, %arg9: memref<1x32x1xf32, #tpu.memory_space<vmem>>, %arg10: memref<32x1xf32, #tpu.memory_space<vmem>>) attributes {dimension_semantics = [#tpu.dimension_semantics<parallel>, #tpu.dimension_semantics<arbitrary>], iteration_bounds = array<i64: 2, 2>, scalar_prefetch = 0 : i64, scratch_operands = 1 : i64, tpu.core_type = #tpu.core_type<tc>, window_params = [{transform_indices = @transform_0, window_bounds = array<i64: 1>}, {transform_indices = @transform_1, window_bounds = array<i64: 1, 3, 128>}, {pipeline_mode = #tpu.pipeline_mode<synchronous>, transform_indices = @transform_2, window_bounds = array<i64: 32, 3>}, {pipeline_mode = #tpu.pipeline_mode<synchronous>, transform_indices = @transform_3, window_bounds = array<i64: 32, 1>}, {pipeline_mode = #tpu.pipeline_mode<synchronous>, transform_indices = @transform_4, window_bounds = array<i64: 32, 128>}, {pipeline_mode = #tpu.pipeline_mode<synchronous>, transform_indices = @transform_5, window_bounds = array<i64: 1, 128>}, {transform_indices = @transform_6, window_bounds = array<i64: 1, 1, 128>}, {transform_indices = @transform_7, window_bounds = array<i64: 1, 32, 1>}]} {
    %c0_i32 = arith.constant 0 : i32
    %0 = arith.cmpi eq, %arg1, %c0_i32 : i32
    %1 = arith.extui %0 : i1 to i32
    %c0_i32_0 = arith.constant 0 : i32
    %2 = arith.cmpi ne, %1, %c0_i32_0 : i32
    scf.if %2 {
      %cst_14 = arith.constant 0.000000e+00 : f32
      %40 = vector.broadcast %cst_14 : f32 to vector<32x1xf32>
      %c0_15 = arith.constant 0 : index
      %c0_16 = arith.constant 0 : index
      %41 = vector.load %arg10[%c0_15, %c0_16] : memref<32x1xf32, #tpu.memory_space<vmem>>, vector<32x1xf32>
      tpu.vector_store %arg10[%c0_15, %c0_16], %40 {strides = array<i32>} : memref<32x1xf32, #tpu.memory_space<vmem>>, vector<32x1xf32>,
    } else {
    }
    %c0 = arith.constant 0 : index
    %c0_1 = arith.constant 0 : index
    %c0_2 = arith.constant 0 : index
    %3 = vector.load %arg3[%c0, %c0_1, %c0_2] : memref<1x3x128xf32, #tpu.memory_space<vmem>>, vector<1x3x128xf32>
    %4 = vector.shape_cast %3 : vector<1x3x128xf32> to vector<3x128xf32>
    %c0_3 = arith.constant 0 : index
    %c0_4 = arith.constant 0 : index
    %5 = vector.load %arg4[%c0_3, %c0_4] : memref<32x3xf32, #tpu.memory_space<vmem>>, vector<32x3xf32>
    %6 = vector.extract_strided_slice %5 {offsets = [0, 0], sizes = [32, 1], strides = [1, 1]} : vector<32x3xf32> to vector<32x1xf32>
    %7 = vector.extract_strided_slice %4 {offsets = [0, 0], sizes = [1, 128], strides = [1, 1]} : vector<3x128xf32> to vector<1x128xf32>
    %8 = vector.broadcast %6 : vector<32x1xf32> to vector<32x128xf32>
    %9 = vector.broadcast %7 : vector<1x128xf32> to vector<32x128xf32>
    %10 = arith.mulf %8, %9 : vector<32x128xf32>
    %11 = vector.extract_strided_slice %5 {offsets = [0, 1], sizes = [32, 1], strides = [1, 1]} : vector<32x3xf32> to vector<32x1xf32>
    %12 = vector.extract_strided_slice %4 {offsets = [1, 0], sizes = [1, 128], strides = [1, 1]} : vector<3x128xf32> to vector<1x128xf32>
    %13 = vector.broadcast %11 : vector<32x1xf32> to vector<32x128xf32>
    %14 = vector.broadcast %12 : vector<1x128xf32> to vector<32x128xf32>
    %15 = arith.mulf %13, %14 : vector<32x128xf32>
    %16 = arith.addf %10, %15 : vector<32x128xf32>
    %17 = vector.extract_strided_slice %5 {offsets = [0, 2], sizes = [32, 1], strides = [1, 1]} : vector<32x3xf32> to vector<32x1xf32>
    %18 = vector.extract_strided_slice %4 {offsets = [2, 0], sizes = [1, 128], strides = [1, 1]} : vector<3x128xf32> to vector<1x128xf32>
    %19 = vector.broadcast %17 : vector<32x1xf32> to vector<32x128xf32>
    %20 = vector.broadcast %18 : vector<1x128xf32> to vector<32x128xf32>
    %21 = arith.mulf %19, %20 : vector<32x128xf32>
    %22 = arith.addf %16, %21 : vector<32x128xf32>
    %c0_5 = arith.constant 0 : index
    %c0_6 = arith.constant 0 : index
    %23 = vector.load %arg5[%c0_5, %c0_6] : memref<32x1xf32, #tpu.memory_space<vmem>>, vector<32x1xf32>
    %24 = vector.broadcast %23 : vector<32x1xf32> to vector<32x128xf32>
    %25 = arith.addf %22, %24 : vector<32x128xf32>
    %cst = arith.constant 0.000000e+00 : f32
    %26 = vector.broadcast %cst : f32 to vector<32x128xf32>
    %27 = arith.maximumf %25, %26 : vector<32x128xf32>
    %cst_7 = arith.constant 9.99999997E-7 : f32
    %28 = vector.broadcast %cst_7 : f32 to vector<32x128xf32>
    %29 = arith.maximumf %27, %28 : vector<32x128xf32>
    %30 = arith.mulf %29, %29 : vector<32x128xf32>
    %31 = arith.mulf %30, %29 : vector<32x128xf32>
    %c0_8 = arith.constant 0 : index
    %c0_9 = arith.constant 0 : index
    %32 = vector.load %arg10[%c0_8, %c0_9] : memref<32x1xf32, #tpu.memory_space<vmem>>, vector<32x1xf32>
    %cst_10 = arith.constant dense<0.000000e+00> : vector<32xf32>
    %33 = vector.multi_reduction <add>, %31, %cst_10 [1] : vector<32x128xf32> to vector<32xf32>
    %34 = vector.shape_cast %33 : vector<32xf32> to vector<32x1xf32>
    %35 = arith.addf %32, %34 : vector<32x1xf32>
    %c0_11 = arith.constant 0 : index
    %c0_12 = arith.constant 0 : index
    %36 = vector.load %arg10[%c0_11, %c0_12] : memref<32x1xf32, #tpu.memory_space<vmem>>, vector<32x1xf32>
    tpu.vector_store %arg10[%c0_11, %c0_12], %35 {strides = array<i32>} : memref<32x1xf32, #tpu.memory_space<vmem>>, vector<32x1xf32>,
    %c1_i32 = arith.constant 1 : i32
    %37 = arith.cmpi eq, %arg1, %c1_i32 : i32
    %38 = arith.extui %37 : i1 to i32
    %c0_i32_13 = arith.constant 0 : i32
    %39 = arith.cmpi ne, %38, %c0_i32_13 : i32
    scf.if %39 {
      %c0_14 = arith.constant 0 : index
      %c0_15 = arith.constant 0 : index
      %40 = vector.load %arg10[%c0_14, %c0_15] : memref<32x1xf32, #tpu.memory_space<vmem>>, vector<32x1xf32>
      %cst_16 = arith.constant 3.906250e-03 : f32
      %41 = vector.broadcast %cst_16 : f32 to vector<32x1xf32>
      %42 = arith.mulf %40, %41 : vector<32x1xf32>
      %43 = math.log %42 : vector<32x1xf32>
      %cst_17 = arith.constant 0.333333343 : f32
      %44 = vector.broadcast %cst_17 : f32 to vector<32x1xf32>
      %45 = arith.mulf %43, %44 : vector<32x1xf32>
      %46 = math.exp %45 : vector<32x1xf32>
      %c0_18 = arith.constant 0 : index
      %c0_19 = arith.constant 0 : index
      %c0_20 = arith.constant 0 : index
      %47 = vector.load %arg9[%c0_18, %c0_19, %c0_20] : memref<1x32x1xf32, #tpu.memory_space<vmem>>, vector<1x32x1xf32>
      %48 = vector.shape_cast %47 : vector<1x32x1xf32> to vector<32x1xf32>
      %49 = vector.shape_cast %46 : vector<32x1xf32> to vector<1x32x1xf32>
      tpu.vector_store %arg9[%c0_18, %c0_19, %c0_20], %49 {strides = array<i32>} : memref<1x32x1xf32, #tpu.memory_space<vmem>>, vector<1x32x1xf32>,
      %c0_21 = arith.constant 0 : index
      %c0_22 = arith.constant 0 : index
      %50 = vector.load %arg6[%c0_21, %c0_22] : memref<32x128xf32, #tpu.memory_space<vmem>>, vector<32x128xf32>
      %51 = vector.broadcast %46 : vector<32x1xf32> to vector<32x128xf32>
      %52 = arith.mulf %50, %51 : vector<32x128xf32>
      %cst_23 = arith.constant dense<0.000000e+00> : vector<128xf32>
      %53 = vector.multi_reduction <add>, %52, %cst_23 [0] : vector<32x128xf32> to vector<128xf32>
      %54 = vector.shape_cast %53 : vector<128xf32> to vector<1x128xf32>
      %c0_24 = arith.constant 0 : index
      %c0_25 = arith.constant 0 : index
      %55 = vector.load %arg7[%c0_24, %c0_25] : memref<1x128xf32, #tpu.memory_space<vmem>>, vector<1x128xf32>
      %56 = arith.addf %54, %55 : vector<1x128xf32>
      %c0_26 = arith.constant 0 : index
      %c0_27 = arith.constant 0 : index
      %c0_28 = arith.constant 0 : index
      %57 = vector.load %arg8[%c0_26, %c0_27, %c0_28] : memref<1x1x128xf32, #tpu.memory_space<vmem>>, vector<1x1x128xf32>
      %58 = vector.shape_cast %57 : vector<1x1x128xf32> to vector<1x128xf32>
      %59 = vector.shape_cast %56 : vector<1x128xf32> to vector<1x1x128xf32>
      tpu.vector_store %arg8[%c0_26, %c0_27, %c0_28], %59 {strides = array<i32>} : memref<1x1x128xf32, #tpu.memory_space<vmem>>, vector<1x1x128xf32>,
    } else {
    }
    return
  }
  func.func @transform_0(%arg0: i32, %arg1: i32) -> i32 {
    %c0_i32 = arith.constant 0 : i32
    %c0_i32_0 = arith.constant 0 : i32
    return %c0_i32 : i32
  }
  func.func @transform_1(%arg0: i32, %arg1: i32) -> (i32, i32, i32) {
    %c0_i32 = arith.constant 0 : i32
    %c0_i32_0 = arith.constant 0 : i32
    return %arg0, %c0_i32, %arg1 : i32, i32, i32
  }
  func.func @transform_2(%arg0: i32, %arg1: i32) -> (i32, i32) {
    %c0_i32 = arith.constant 0 : i32
    %c0_i32_0 = arith.constant 0 : i32
    %c0_i32_1 = arith.constant 0 : i32
    return %c0_i32, %c0_i32_0 : i32, i32
  }
  func.func @transform_3(%arg0: i32, %arg1: i32) -> (i32, i32) {
    %c0_i32 = arith.constant 0 : i32
    %c0_i32_0 = arith.constant 0 : i32
    %c0_i32_1 = arith.constant 0 : i32
    return %c0_i32, %c0_i32_0 : i32, i32
  }
  func.func @transform_4(%arg0: i32, %arg1: i32) -> (i32, i32) {
    %c0_i32 = arith.constant 0 : i32
    %c0_i32_0 = arith.constant 0 : i32
    %c0_i32_1 = arith.constant 0 : i32
    return %c0_i32, %c0_i32_0 : i32, i32
  }
  func.func @transform_5(%arg0: i32, %arg1: i32) -> (i32, i32) {
    %c0_i32 = arith.constant 0 : i32
    %c0_i32_0 = arith.constant 0 : i32
    %c0_i32_1 = arith.constant 0 : i32
    return %c0_i32, %c0_i32_0 : i32, i32
  }
  func.func @transform_6(%arg0: i32, %arg1: i32) -> (i32, i32, i32) {
    %c0_i32 = arith.constant 0 : i32
    %c0_i32_0 = arith.constant 0 : i32
    %c0_i32_1 = arith.constant 0 : i32
    return %arg0, %c0_i32, %c0_i32_0 : i32, i32, i32
  }
  func.func @transform_7(%arg0: i32, %arg1: i32) -> (i32, i32, i32) {
    %c0_i32 = arith.constant 0 : i32
    %c0_i32_0 = arith.constant 0 : i32
    %c0_i32_1 = arith.constant 0 : i32
    return %arg0, %c0_i32, %c0_i32_0 : i32, i32, i32
  }
}

</mosaic_0001>

<bundles_post_ra>
// kernel: tpu_custom_call.1
= control target key start
LH: loop header
LB: loop body
LE: loop exit
PB: predicated region body
PF: predicated region fallthrough
CT: control target
= control target key end

     0   :  { %14 = vsyncpa [#allocation5], 0  ;;  %s1125_s0 = inlined_call_operand.<no memory space> [shape: f32[1], index: 0, kind: input, shape index: {}]   ;;  %s1126_s1 = inlined_call_operand.vmem [shape: f32[2,3,256], index: 1, kind: input, shape index: {}]   ;;  %s1127_s2 = inlined_call_operand.vmem [shape: f32[32,3], index: 2, kind: input, shape index: {}]   ;;  %s1128_s3 = inlined_call_operand.vmem [shape: f32[32,1], index: 3, kind: input, shape index: {}]   ;;  %s1129_s4 = inlined_call_operand.vmem [shape: f32[32,128], index: 4, kind: input, shape index: {}]   ;;  %s1130_s5 = inlined_call_operand.vmem [shape: f32[1,128], index: 5, kind: input, shape index: {}]   ;;  %s1131_s6 = inlined_call_operand.hbm [shape: f32[2,1,128], index: 6, kind: output, shape index: {0}]   ;;  %s1132_s7 = inlined_call_operand.vmem [shape: f32[2,32,1], index: 7, kind: output, shape index: {1}]  }
   0x1   :  { %16 = vsyncpa [#allocation5 + $0x1], 0  ;;  %s928_s23 = smov 0   ;;  %s930_s24 = smov 0  }
   0x2   :  { %s932_s25 = smov 0   ;;  %s934_s26 = smov 0  }
   0x3   :  { %s936_s27 = smov 0   ;;  %s938_s28 = smov 0  }
   0x4   :  { %s940_s29 = smov 0   ;;  %s942_s30 = smov 0  }
   0x5 LB: > { %1135 = sst [smem:[#allocation7_spill]] %s876_s29  ;;  %s670_s8 = sadd.s32 4294967295, %s880_s30   ;;  %s880_s30 = sphi %s942_s30, %s22_s30   ;;  %s876_s29 = sphi %s940_s29, %s1142_s29   ;;  %s872_s28 = sphi %s938_s28, %s1147_s28   ;;  %s868_s27 = sphi %s936_s27, %s1140_s27   ;;  %s864_s26 = sphi %s934_s26, %s1146_s26   ;;  %s860_s25 = sphi %s932_s25, %s1145_s25   ;;  %s856_s24 = sphi %s930_s24, %s1144_s24   ;;  %s852_s23 = sphi %s928_s23, %s1143_s23  }
   0x6   : > { %s671_s9 = sadd.s32 4294967294, %s880_s30   ;;  %s31_s10 = sadd.s32 1, %s872_s28 }
   0x7   : > { %p32_p0 = scmp.ge.s32.totalorder %s31_s10, 2  ;;  %s34_s11 = sadd.s32 1, %s876_s29 }
   0x8   : > { %p184_p1 = scmp.ne.s32.totalorder %s860_s25, %s856_s24  ;;  %p185_p2 = scmp.eq.s32.totalorder %s670_s8, 3 }
   0x9   : > { %s1149_s10 = smov (%p32_p0, %s31_s10), 0  ;;  %s1151_s11 = smov (!%p32_p0, %s34_s11), %s876_s29 }
   0xa   : > { %1136 = sst [smem:[#allocation8_spill]] %s1149_s10  ;;  %p977_p3 = por %p185_p2, %p184_p1 }
   0xb   : > { %p190_p4 = scmp.ne.s32.totalorder %s856_s24, %s852_s23  ;;  %p36_p5 = scmp.ge.s32.totalorder %s1151_s11, 2 }
   0xc   : > { %p191_p6 = scmp.eq.s32.totalorder %s671_s9, 3  ;;  %p674_p7 = scmp.ge.s32.totalorder %s880_s30, 1 }
   0xd   : > { %p261_p8 = scmp.lt.s32.totalorder %s880_s30, 5  ;;  %s1153_s11 = smov (%p36_p5, %s1151_s11), 0 }
   0xe   : > { %1138 = sst [smem:[#allocation9_spill]] %s1153_s11  ;;  %p987_p9 = por %p191_p6, %p190_p4 }
   0xf   : > { %p262_p10 = pnand %p674_p7, %p261_p8  ;;  %s171_s14 = ssub.s32 %s876_s29, %s1153_s11 }
  0x10   : > { %s174_s15 = sadd.s32 1, %s860_s25  ;;  %p172_p11 = scmp.eq.s32.totalorder %s171_s14, 0 }
  0x11   : > { %265 = sbr.rel (%p262_p10) target bundleno = 572 (0x23c), region = 44  ;;  %s291_s17 = sand.u32 (!%p262_p10), 1, %s856_s24  }
  0x12   : > { %s995_s16 = scalar_select %p172_p11, %s860_s25, %s174_s15  }
  0x13   : > { %p300_p12 = scmp.lt.s32.totalorder (!%p262_p10), %s868_s27, 1  ;;  %p302_p13 = scmp.lt.s32.totalorder (!%p262_p10), %s864_s26, 1 }
  0x14   : > { %s1014_s29 = scalar_lea.vmem (!%p262_p10), [#allocation4], %s291_s17  ;;  %p679_p0 = scmp.ne.s32.totalorder (!%p262_p10), %s864_s26, 0 }
  0x18   : > { %s301_s18 = scalar_select %p300_p12, %s868_s27, 1 }
  0x19   : > { %s303_s19 = scalar_select %p302_p13, %s864_s26, 1 }
  0x1a   : > { %s675_s20 = sshll.u32 %s301_s18, 1  ;;  %s684_s21 = sshll.u32 %s301_s18, 5  ;;  %vm317_vm0 = vcmask (!%p679_p0), 7168   ;;  %v882_v0 = vmov (!%p679_p0), 0.0  }
  0x1b   : > { %s305_s22 = sadd.s32 %s675_s20, %s303_s19  ;;  %s1005_s9 = scalar_lea.vmem %s1132_s7, %s684_s21  ;;  %318 = vst.msk [vmem:[#allocation2] sm:$0xff] (!%p679_p0), %vm317_vm0, %v882_v0  ;;  %319 = vst.msk [vmem:[#allocation2 + $0x8] sm:$0xff] (!%p679_p0), %vm317_vm0, %v882_v0 }
  0x1c   : > { %s676_s14 = sshll.u32 %s305_s22, 2  ;;  %316 = sbr.rel (%p679_p0) target bundleno = 35 (0x23), region = 48  ;;  %320 = vst.msk [vmem:[#allocation2 + $0x10] sm:$0xff] (!%p679_p0), %vm317_vm0, %v882_v0  ;;  %321 = vst.msk [vmem:[#allocation2 + $0x18] sm:$0xff] (!%p679_p0), %vm317_vm0, %v882_v0 }
  0x1d   : > { %s1010_s10 = scalar_lea.vmem %s1126_s1, %s676_s14 }
  0x23 PF: > { %v325_v1 = vld [vmem:[%s1127_s2 + $0x10] sm:$0xff]  ;;  %v323_v2 = vld [vmem:[%s1127_s2] sm:$0xff]  ;;  %v883_v3 = vmov 1   ;;  %v884_v4 = vmov 0   ;;  %v326_v5 = vld [vmem:[%s1127_s2 + $0x18] sm:$0xff]  ;;  %v885_v7 = vmov 2   ;;  %v347_v14 = vlaneseq }
  0x24   : > { %762 = vset.pattern.permute.xlu0 %v883_v3  ;;  %761 = vset.pattern.permute.xlu1 %v884_v4  ;;  %v324_v6 = vld [vmem:[%s1127_s2 + $0x8] sm:$0xff]  ;;  %v411_v8 = vld [vmem:[%s1128_s3] sm:$0xff]  ;;  %v414_v9 = vld [vmem:[%s1128_s3 + $0x18] sm:$0xff]  ;;  %vm471_vm1 = vcmask 7168   ;;  %p680_p1 = scmp.ne.s32.totalorder %s864_s26, 1 }
  0x25   : > { %339 = vperm.xlu1 %761, %v325_v1   ;;  %356 = vperm.xlu0 %762, %v323_v2   ;;  %v412_v10 = vld [vmem:[%s1128_s3 + $0x8] sm:$0xff]  ;;  %v413_v11 = vld [vmem:[%s1128_s3 + $0x10] sm:$0xff]  ;;  %v348_v16 = vshrl.u32 %v347_v14, 7  ;;  %v322_v21 = vld [vmem:[%s1010_s10] sm:$0x7] }
  0x27   : > { %v349_v18 = vsub.s32 0, %v348_v16  ;;  %v373_v22 = vsub.s32 1, %v348_v16  ;;  %v401_v24 = vsub.s32 2, %v348_v16  ;;  %v458_v16 = vld [vmem:[#allocation2 + $0x18] sm:$0xff] }
  0x29   : > { %344 = vperm.xlu1 %761, %v326_v5   ;;  %368 = vperm.xlu0 %762, %v326_v5   ;;  %v350_v23 = vrot.slane %v322_v21, %v349_v18  ;;  %v374_v27 = vrot.slane %v322_v21, %v373_v22  ;;  %v402_v30 = vrot.slane %v322_v21, %v401_v24  ;;  %v457_v22 = vld [vmem:[#allocation2 + $0x10] sm:$0xff] }
  0x2d   : > { %763 = vset.pattern.permute.xlu1 %v883_v3  ;;  %765 = vset.pattern.permute.xlu0 %v885_v7 }
  0x2e   : > { %360 = vperm.xlu1 %763, %v324_v6   ;;  %388 = vperm.xlu0 %765, %v324_v6  }
  0x32   : > { %364 = vperm.xlu1 %763, %v325_v1   ;;  %766 = vset.pattern.permute.xlu0 %v884_v4 }
  0x33   : > { %329 = vperm.xlu0 %766, %v323_v2  }
  0x36   : > { %764 = vset.pattern.permute.xlu1 %v885_v7 }
  0x37   : > { %384 = vperm.xlu1 %764, %v323_v2   ;;  %334 = vperm.xlu0 %766, %v324_v6  }
  0x3b   : > { %392 = vperm.xlu1 %764, %v325_v1   ;;  %417 = vperm.xlu0 %766, %v411_v8  }
  0x3f   : > { %396 = vperm.xlu1 %764, %v326_v5   ;;  %432 = vperm.xlu0 %766, %v414_v9  }
  0x43   : > { %767 = vset.pattern.permute.xlu1 %v884_v4 }
  0x44   : > { %422 = vperm.xlu1 %767, %v412_v10  }
  0x48   : > { %427 = vperm.xlu1 %767, %v413_v11  }
  0xa4   : > { %v340_v12 = vpop.permute.xlu1 %339  ;;  %v357_v13 = vpop.permute.xlu0 %356 }
  0xa5   : > { %v375_v29 = vmul.f32 %v374_v27, %v357_v13  ;;  %v353_v53 = vmul.f32 %v350_v23, %v340_v12  ;;  %v455_v13 = vld [vmem:[#allocation2] sm:$0xff] }
  0xa8   : > { %v345_v15 = vpop.permute.xlu1 %344  ;;  %v369_v17 = vpop.permute.xlu0 %368 }
  0xa9   : > { %v354_v39 = vmul.f32 %v350_v23, %v345_v15  ;;  %v378_v40 = vmul.f32 %v374_v27, %v369_v17  ;;  %v456_v17 = vld [vmem:[#allocation2 + $0x8] sm:$0xff] }
  0xab   : > { %v382_v46 = vadd.f32 %v378_v40, %v354_v39 }
  0xad   : > { %v361_v19 = vpop.permute.xlu1 %360  ;;  %v389_v20 = vpop.permute.xlu0 %388 }
  0xae   : > { %v376_v42 = vmul.f32 %v374_v27, %v361_v19  ;;  %v404_v49 = vmul.f32 %v402_v30, %v389_v20 }
  0xb1   : > { %v365_v25 = vpop.permute.xlu1 %364 }
  0xb2   : > { %v330_v26 = vpop.permute.xlu0 %329  ;;  %v377_v50 = vmul.f32 %v374_v27, %v365_v25 }
  0xb3   : > { %v351_v28 = vmul.f32 %v350_v23, %v330_v26 }
  0xb4   : > { %v381_v60 = vadd.f32 %v377_v50, %v353_v53 }
  0xb5   : > { %v379_v33 = vadd.f32 %v375_v29, %v351_v28  ;;  %v886_v28 = vmov (!%p680_p1), 0  }
  0xb6   : > { %v385_v31 = vpop.permute.xlu1 %384  ;;  %v335_v32 = vpop.permute.xlu0 %334  ;;  %769 = vset.pattern.permute.xlu1 (!%p680_p1), %v886_v28  ;;  %768 = vset.pattern.permute.xlu0 (!%p680_p1), %v886_v28 }
  0xb7   : > { %v403_v34 = vmul.f32 %v402_v30, %v385_v31  ;;  %v352_v36 = vmul.f32 %v350_v23, %v335_v32 }
  0xb9   : > { %v407_v35 = vadd.f32 %v403_v34, %v379_v33  ;;  %v380_v44 = vadd.f32 %v376_v42, %v352_v36 }
  0xba   : > { %v393_v37 = vpop.permute.xlu1 %392  ;;  %v418_v38 = vpop.permute.xlu0 %417 }
  0xbb   : > { %v435_v41 = vadd.f32 %v418_v38, %v407_v35  ;;  %v405_v54 = vmul.f32 %v402_v30, %v393_v37  ;;  %v408_v56 = vadd.f32 %v404_v49, %v380_v44 }
  0xbd   : > { %v439_v43 = vmax.f32 %v435_v41, 0.0  ;;  %v409_v0 = vadd.f32 %v405_v54, %v381_v60 }
  0xbe   : > { %v397_v45 = vpop.permute.xlu1 %396  ;;  %v433_v55 = vpop.permute.xlu0 %432 }
  0xbf   : > { %v443_v47 = vmax.f32 %v439_v43, 1e-06  ;;  %v406_v48 = vmul.f32 %v402_v30, %v397_v45 }
  0xc1   : > { %v410_v51 = vadd.f32 %v406_v48, %v382_v46  ;;  %v447_v52 = vmul.f32 %v443_v47, %v443_v47 }
  0xc3   : > { %v438_v57 = vadd.f32 %v433_v55, %v410_v51  ;;  %v423_v58 = vpop.permute.xlu1 %422  ;;  %v451_v59 = vmul.f32 %v447_v52, %v443_v47 }
  0xc4   : > { %v436_v61 = vadd.f32 %v423_v58, %v408_v56  ;;  %v512_v56 = vld [vmem:[%s1129_s4] sm:$0xff] (!%p680_p1)  ;;  %v514_v58 = vld [vmem:[%s1129_s4 + $0x10] sm:$0xff] (!%p680_p1) }
  0xc5   : > { %v442_v62 = vmax.f32 %v438_v57, 0.0  ;;  %459 = vadd.xlane.f32.xlu1 %v451_v59  ;;  %v513_v57 = vld [vmem:[%s1129_s4 + $0x8] sm:$0xff] (!%p680_p1) }
  0xc6   : > { %v440_v63 = vmax.f32 %v436_v61, 0.0 }
  0xc7   : > { %v446_v1 = vmax.f32 %v442_v62, 1e-06  ;;  %v428_v2 = vpop.permute.xlu1 %427  ;;  %v515_v62 = vld [vmem:[%s1129_s4 + $0x18] sm:$0xff] (!%p680_p1) }
  0xc8   : > { %v444_v3 = vmax.f32 %v440_v63, 1e-06  ;;  %v437_v4 = vadd.f32 %v428_v2, %v409_v0 }
  0xc9   : > { %v450_v5 = vmul.f32 %v446_v1, %v446_v1 }
  0xca   : > { %v441_v6 = vmax.f32 %v437_v4, 0.0  ;;  %v448_v7 = vmul.f32 %v444_v3, %v444_v3 }
  0xcb   : > { %v454_v8 = vmul.f32 %v450_v5, %v446_v1 }
  0xcc   : > { %v445_v9 = vmax.f32 %v441_v6, 1e-06  ;;  %v452_v10 = vmul.f32 %v448_v7, %v444_v3 }
  0xcd   : > { %465 = vadd.xlane.f32.xlu1 %v454_v8 }
  0xce   : > { %461 = vadd.xlane.f32.xlu0 %v452_v10  ;;  %v449_v11 = vmul.f32 %v445_v9, %v445_v9  ;;  %v549_v10 = vld [vmem:[%s1130_s5] sm:$0x1] (!%p680_p1) }
  0xd0   : > { %v453_v12 = vmul.f32 %v449_v11, %v445_v9 }
  0xd2   : > { %463 = vadd.xlane.f32.xlu0 %v453_v12 }
 0x152   : > { %v460_v14 = vpop.xlane.xlu1 %459 }
 0x153   : > { %v467_v15 = vadd.f32 %v460_v14, %v455_v13 }
 0x155   : > { %472 = vst.msk [vmem:[#allocation2] sm:$0xff] %vm471_vm1, %v467_v15 }
 0x15a   : > { %v466_v18 = vpop.xlane.xlu1 %465 }
 0x15b   : > { %v470_v19 = vadd.f32 %v466_v18, %v458_v16  ;;  %v462_v20 = vpop.xlane.xlu0 %461 }
 0x15c   : > { %v468_v21 = vadd.f32 %v462_v20, %v456_v17  ;;  %479 = sbr.rel (%p680_p1) target bundleno = 548 (0x224), region = 52  ;;  %v480_v26 = vld [vmem:[#allocation2] sm:$0xff] (!%p680_p1) }
 0x15d   : > { %475 = vst.msk [vmem:[#allocation2 + $0x18] sm:$0xff] %vm471_vm1, %v470_v19  ;;  %v484_v30 = vmul.f32 (!%p680_p1), 0.00390625, %v480_v26 }
 0x15e   : > { %473 = vst.msk [vmem:[#allocation2 + $0x8] sm:$0xff] %vm471_vm1, %v468_v21 }
 0x15f   : > { %v464_v23 = vpop.xlane.xlu0 %463 }
 0x160   : > { %v469_v24 = vadd.f32 %v464_v23, %v457_v22 }
 0x162   : > { %474 = vst.msk [vmem:[#allocation2 + $0x10] sm:$0xff] %vm471_vm1, %v469_v24 }
 0x164   : > { %v483_v27 = vld [vmem:[#allocation2 + $0x18] sm:$0xff] }
 0x165   : > { %v487_v31 = vmul.f32 0.00390625, %v483_v27  ;;  %v481_v32 = vld [vmem:[#allocation2 + $0x8] sm:$0xff] }
 0x166   : > { %v485_v33 = vmul.f32 0.00390625, %v481_v32 }
 0x169   : > { %v482_v25 = vld [vmem:[#allocation2 + $0x10] sm:$0xff] }
 0x16a   : > { %v486_v29 = vmul.f32 0.00390625, %v482_v25 }
 0x16c   : > { %770 = vlog2.f32 %v486_v29 }
 0x16d   : > { %772 = vlog2.f32 %v484_v30 }
 0x16e   : > { %774 = vlog2.f32 %v487_v31 }
 0x16f   : > { %776 = vlog2.f32 %v485_v33 }
 0x176   : > { %v771_v34 = vpop.eup %770 }
 0x177   : > { %v773_v35 = vpop.eup %772  ;;  %v493_v36 = vmul.f32 0.6931472, %v771_v34 }
 0x178   : > { %v775_v37 = vpop.eup %774  ;;  %v489_v38 = vmul.f32 0.6931472, %v773_v35 }
 0x179   : > { %v777_v39 = vpop.eup %776  ;;  %v498_v40 = vmul.f32 0.33333334, %v493_v36  ;;  %v495_v41 = vmul.f32 0.6931472, %v775_v37 }
 0x17a   : > { %v496_v42 = vmul.f32 0.33333334, %v489_v38  ;;  %v491_v43 = vmul.f32 0.6931472, %v777_v39 }
 0x17b   : > { %v504_v44 = vmul.f32 1.442695, %v498_v40  ;;  %v499_v45 = vmul.f32 0.33333334, %v495_v41 }
 0x17c   : > { %v500_v46 = vmul.f32 1.442695, %v496_v42  ;;  %v497_v47 = vmul.f32 0.33333334, %v491_v43 }
 0x17d   : > { %778 = vpow2.f32 %v504_v44  ;;  %v506_v48 = vmul.f32 1.442695, %v499_v45 }
 0x17e   : > { %780 = vpow2.f32 %v500_v46  ;;  %v502_v49 = vmul.f32 1.442695, %v497_v47 }
 0x17f   : > { %782 = vpow2.f32 %v506_v48 }
 0x180   : > { %784 = vpow2.f32 %v502_v49 }
 0x187   : > { %v779_v50 = vpop.eup %778 }
 0x188   : > { %v781_v51 = vpop.eup %780  ;;  %528 = vperm.xlu1 %769, %v779_v50   ;;  %510 = vst.msk [vmem:[%s1005_s9 + $0x10] sm:$0xff] %vm471_vm1, %v779_v50 }
 0x189   : > { %v783_v52 = vpop.eup %782  ;;  %518 = vperm.xlu0 %768, %v781_v51   ;;  %508 = vst.msk [vmem:[%s1005_s9] sm:$0xff] %vm471_vm1, %v781_v51 }
 0x18a   : > { %v785_v53 = vpop.eup %784  ;;  %511 = vst.msk [vmem:[%s1005_s9 + $0x18] sm:$0xff] %vm471_vm1, %v783_v52 }
 0x18b   : > { %509 = vst.msk [vmem:[%s1005_s9 + $0x8] sm:$0xff] %vm471_vm1, %v785_v53 }
 0x18c   : > { %533 = vperm.xlu1 %769, %v783_v52  }
 0x18d   : > { %523 = vperm.xlu0 %768, %v785_v53  }
 0x207   : > { %v529_v54 = vpop.permute.xlu1 %528 }
 0x208   : > { %v519_v55 = vpop.permute.xlu0 %518  ;;  %v538_v0 = vmul.f32 %v529_v54, %v514_v58 }
 0x209   : > { %v536_v60 = vmul.f32 %v519_v55, %v512_v56 }
 0x20b   : > { %v534_v63 = vpop.permute.xlu1 %533 }
 0x20c   : > { %v524_v59 = vpop.permute.xlu0 %523  ;;  %v539_v2 = vmul.f32 %v534_v63, %v515_v62 }
 0x20d   : > { %v537_v61 = vmul.f32 %v524_v59, %v513_v57 }
 0x20f   : > { %v540_v1 = vadd.f32 %v537_v61, %v536_v60 }
 0x211   : > { %v541_v3 = vadd.f32 %v540_v1, %v538_v0 }
 0x213   : > { %v542_v4 = vadd.f32 %v541_v3, %v539_v2 }
 0x215   : > { %v543_v5 = vrot.slane %v542_v4, 4 }
 0x217   : > { %v544_v6 = vadd.f32 %v543_v5, %v542_v4 }
 0x219   : > { %v545_v7 = vrot.slane %v544_v6, 2 }
 0x21b   : > { %v546_v8 = vadd.f32 %v545_v7, %v544_v6 }
 0x21d   : > { %v547_v9 = vrot.slane %v546_v8, 1 }
 0x21f   : > { %v548_v11 = vadd.f32 %v547_v9, %v546_v8 }
 0x221   : > { %v550_v12 = vadd.f32 %v549_v10, %v548_v11 }
 0x223   : > { %551 = vst [vmem:[%s1014_s29] sm:$0x1] %v550_v12 }
 0x224 PF: > { %s681_s20 = sshll.u32 %s868_s27, 4  ;;  %s570_s10 = sshll.u32 %s1014_s29, 4  ;;  %s571_s10 = int_to_ptr.vmem [resolvable:$true] %s570_s10 }
 0x225   : > { %s1075_s26 = scalar_lea.hbm %s1131_s6, %s681_s20  ;;  %s553_s0 = scalar_lea.sflag [#allocation5], %s291_s17 }
 0x226   : > { %s786_s8 = scalar_lea.vmem %s571_s10, 16  ;;  %s887_s14 = smov [#allocation4]  }
 0x227   : > { %p787_p2 = scmp.ne.s32.totalorder %s571_s10, %s786_s8  ;;  %s790_s15 = sshll.u32 %s887_s14, 4  ;;  %s791_s15 = int_to_ptr.vmem [resolvable:$false] %s790_s15 }
 0x228   : > { %s792_s9 = scalar_lea.vmem %s791_s15, 32  ;;  %p793_p6 = scmp.lt.s32.totalorder %s571_s10, %s791_s15 }
 0x229   : > { %p788_p4 = pnand %p787_p2, %p977_p3  ;;  %p794_p7 = scmp.lt.s32.totalorder %s792_s9, %s786_s8 }
 0x22b   : > { %p789_p5 = pneg %p788_p4  ;;  %p795_p8 = por %p794_p7, %p793_p6 }
 0x22d   : > { %p796_p10 = pnand %p795_p8, %p789_p5 }
 0x22f   : > { %799 = shalt.err (!%p796_p10)
}
 0x230   : > { %s800_s27 = scalar_lea.hbm %s1075_s26, 16  ;;  %s804_s18 = scalar_lea.hbm %s1131_s6, 32 }
 0x231   : > { %p801_p11 = scmp.ne.s32.totalorder %s1075_s26, %s800_s27  ;;  %p805_p0 = scmp.lt.u32.totalorder %s1075_s26, %s1131_s6 }
 0x232   : > { %p806_p1 = scmp.lt.u32.totalorder %s804_s18, %s800_s27  ;;  %p808_p4 = scmp.lt.u32.totalorder %s800_s27, %s1075_s26 }
 0x233   : > { %p802_p12 = pnand %p801_p11, %p977_p3 }
 0x234   : > { %p807_p2 = por %p806_p1, %p805_p0 }
 0x235   : > { %p803_p13 = pneg %p802_p12 }
 0x236   : > { %p809_p5 = por %p808_p4, %p807_p2 }
 0x238   : > { %p810_p6 = pnand %p809_p5, %p803_p13 }
 0x23a   : > { %813 = shalt.err (!%p810_p6)
}
 0x23b   : > { %685 = dma.vmem_to_hbm [thread:$0]  (%p977_p3), %s571_s10, 16, %s1075_s26, %s553_s0  }
 0x23c PF: > { %p691_p7 = scmp.ge.s32.totalorder %s880_s30, 2  ;;  %s585_s20 = sand.u32 1, %s852_s23  }
 0x23d   : > { %s586_s21 = scalar_lea.sflag [#allocation5], %s585_s20 }
 0x23e   : > { %p688_p8 = pnand %p691_p7, %p987_p9 }
 0x240   : > { %847 = dma.done.wait (!%p688_p8), %s586_s21, 16  }
 0x241   : > { %849 = vsyncadd (!%p688_p8), %s586_s21, 4294967280  ;;  %s22_s30 = sadd.s32 1, %s880_s30   ;;  %s1140_s27 = sld [smem:[#allocation7_spill]] }
 0x242   : > { %p19_p10 = scmp.ge.s32.totalorder %s22_s30, 6   ;;  %s1141_s12 = sld [smem:[#allocation8_spill]] }
 0x243   : > { %s1142_s29 = sld [smem:[#allocation9_spill]]  ;;  %s1143_s23 = smov %s856_s24 }
 0x244   : > { %s1144_s24 = smov %s860_s25  ;;  %s1145_s25 = smov %s995_s16 }
 0x245   : > { %s1146_s26 = smov %s872_s28  ;;  %21 = sbr.rel (!%p19_p10) target bundleno = 5 (0x5), region = 99 }
 0x248   : > { %s1147_s28 = smov %s1141_s12 }
 0x24c   :  { %598 = vsyncpa [#allocation5], 1 }
 0x24d   :  { %600 = vsyncpa [#allocation5 + $0x1], 1 }

</bundles_post_ra>
